<compile_context>
chip_gen: v5e
topology: v5e:2x2
jax: 0.10.0
libtpu: 0.0.40
codegen_flags: <defaults>
</compile_context>

<pallas_src>
import functools
import math

import jax
import jax.numpy as jnp
from jax.experimental import pallas as pl
from jax.experimental.pallas import tpu as pltpu


def mha_self_score_kernel(q_ref, wq_ref, wk_ref, out_ref, *, n_heads, compute_dtype):
    # q_ref  : (Bt, N, D)        input tile (Bt batch elements)
    # wq_ref : (D, H*hd) == (D, D)   fused query projection (heads lane-contiguous)
    # wk_ref : (D, H*hd) == (D, D)   fused key projection
    # out_ref: (Bt, N, H*N)      lane-dense raw scores; head i -> lanes i*N:(i+1)*N
    H = n_heads
    D = wq_ref.shape[0]
    hd = D // H
    N = q_ref.shape[1]

    h = q_ref[...].astype(compute_dtype)                       # (Bt, N, D)
    wq = wq_ref[...].astype(compute_dtype)                     # (D, D)
    wk = wk_ref[...].astype(compute_dtype)                     # (D, D)

    # Fused full-width projections: one (Bt*N, D)@(D, D) MXU matmul each.
    Q = jnp.einsum('bnd,de->bne', h, wq,
                   preferred_element_type=jnp.float32)          # (Bt, N, D) f32
    K = jnp.einsum('bnd,de->bne', h, wk,
                   preferred_element_type=jnp.float32)          # (Bt, N, D) f32

    if compute_dtype != jnp.float32:
        Q = Q.astype(compute_dtype)
        K = K.astype(compute_dtype)

    # Per-head raw compatibilities, written straight into the lane-dense slab.
    for i in range(H):
        Qi = Q[..., i * hd:(i + 1) * hd]                        # (Bt, N, hd)
        Ki = K[..., i * hd:(i + 1) * hd]                        # (Bt, N, hd)
        scores = jnp.einsum('bqe,bke->bqk', Qi, Ki,
                            preferred_element_type=jnp.float32)  # (Bt, N, N)
        out_ref[:, :, i * N:(i + 1) * N] = scores.astype(out_ref.dtype)


def _pick_block_b(B, N, D, H, out_elt, in_elt, w_elt, vmem_budget=48 << 20):
    """Largest divisor of B whose double-buffered tiles fit the VMEM budget, while
    keeping at least 2 grid steps (megacore sharding on v7x) when B >= 2."""
    per_b = 2 * (N * H * N * out_elt) + 2 * (N * D * in_elt)   # out + in, double-buffered
    weights = 2 * 2 * (D * D * w_elt)                          # 2 fused weights, 2 bufs
    budget = max(vmem_budget - weights, per_b)
    max_bb = B if B == 1 else B // 2                            # guarantee n_tiles >= 2
    best = 1
    for cand in range(1, max_bb + 1):
        if B % cand == 0 and cand * per_b <= budget:
            best = cand
    return best


def mha_self_score(q, W_query, W_key, *, block_b=None,
                   use_bf16_operands=False, out_dtype=None):
    """q: (B, N, D); W_query/W_key: (H, D, hd). Returns (H, B, N, N) raw scores."""
    B, N, D = q.shape
    H, Din, hd = W_query.shape
    assert Din == D and H * hd == D
    out_dtype = q.dtype if out_dtype is None else out_dtype

    # Fuse per-head projection weights into lane-contiguous (D, H*hd) matrices so
    # head i of Q is Q[:, :, i*hd:(i+1)*hd].
    wq_all = jnp.transpose(W_query, (1, 0, 2)).reshape(D, H * hd)
    wk_all = jnp.transpose(W_key, (1, 0, 2)).reshape(D, H * hd)

    out_elt = jnp.dtype(out_dtype).itemsize
    in_elt = jnp.dtype(q.dtype).itemsize
    w_elt = jnp.dtype(wq_all.dtype).itemsize

    if block_b is None:
        block_b = _pick_block_b(B, N, D, H, out_elt, in_elt, w_elt)
    assert B % block_b == 0
    n_tiles = B // block_b

    # Explicit scoped-VMEM limit: enough for the chosen tiles (+ headroom), capped at
    # 48 MiB so the same config is valid on v7x's 64 MiB VMEM.
    per_b = 2 * (N * H * N * out_elt) + 2 * (N * D * in_elt)
    needed = 2 * 2 * (D * D * w_elt) + block_b * per_b
    vmem_limit = int(min(max(needed + (8 << 20), 32 << 20), 48 << 20))

    compute_dtype = jnp.bfloat16 if use_bf16_operands else jnp.float32

    flops = 2 * (2 * B * N * D * D) + 2 * B * N * N * D
    bytes_accessed = (B * N * D * in_elt + 2 * D * D * w_elt + B * N * H * N * out_elt)

    kernel = functools.partial(mha_self_score_kernel,
                               n_heads=H, compute_dtype=compute_dtype)

    out_slab = pl.pallas_call(
        kernel,
        out_shape=jax.ShapeDtypeStruct((B, N, H * N), out_dtype),
        grid=(n_tiles,),
        in_specs=[
            pl.BlockSpec((block_b, N, D), lambda b: (b, 0, 0)),   # q tile
            pl.BlockSpec((D, D), lambda b: (0, 0)),               # fused W_query
            pl.BlockSpec((D, D), lambda b: (0, 0)),               # fused W_key
        ],
        out_specs=pl.BlockSpec((block_b, N, H * N), lambda b: (b, 0, 0)),
        compiler_params=pltpu.CompilerParams(
            dimension_semantics=("parallel",),
            vmem_limit_bytes=vmem_limit),
        cost_estimate=pl.CostEstimate(flops=flops, transcendentals=0,
                                      bytes_accessed=bytes_accessed),
    )(q, wq_all, wk_all)

    # Layout plumbing back to the module's (H, B, N, N) output.
    return jnp.transpose(out_slab.reshape(B, N, H, N), (2, 0, 1, 3))


def reference(q, W_query, W_key):
    """Pure-JAX replica of the PyTorch forward (MHA with v=None, with_norm=False)."""
    B, N, D = q.shape
    H, _, hd = W_query.shape
    qflat = q.reshape(-1, D)                                   # (B*N, D)
    Q = jnp.matmul(qflat, W_query).reshape(H, B, N, hd)        # broadcast over heads
    K = jnp.matmul(qflat, W_key).reshape(H, B, N, hd)
    return jnp.einsum('hbqe,hbke->hbqk', Q, K)                 # (H, B, N, N), unscaled


if __name__ == "__main__":
    B, N, D, H = 2, 8, 32, 4
    hd = D // H

    key = jax.random.PRNGKey(0)
    k1, k2, k3 = jax.random.split(key, 3)
    stdv = 1.0 / math.sqrt(hd)
    W_query = jax.random.uniform(k1, (H, D, hd), jnp.float32, -stdv, stdv)
    W_key = jax.random.uniform(k2, (H, D, hd), jnp.float32, -stdv, stdv)
    q = jax.random.normal(k3, (B, N, D), jnp.float32)

    out = mha_self_score(q, W_query, W_key)
    out = jax.block_until_ready(out)

    ref = reference(q, W_query, W_key)
    assert out.shape == (H, B, N, N)
    assert jnp.allclose(out, ref, atol=1e-4, rtol=1e-4), \
        float(jnp.max(jnp.abs(out - ref)))

    print("KERNEL_OK")
</pallas_src>

<mosaic_0001>
module attributes {stable_mosaic.version = 11 : i64} {
  func.func @mha_self_score_kernel(%arg0: i32, %arg1: memref<1x8x32xf32, #tpu.memory_space<vmem>>, %arg2: memref<32x32xf32, #tpu.memory_space<vmem>>, %arg3: memref<32x32xf32, #tpu.memory_space<vmem>>, %arg4: memref<1x8x32xf32, #tpu.memory_space<vmem>>) attributes {dimension_semantics = [#tpu.dimension_semantics<parallel>], iteration_bounds = array<i64: 2>, scalar_prefetch = 0 : i64, scratch_operands = 0 : i64, tpu.core_type = #tpu.core_type<tc>, window_params = [{transform_indices = @transform_0, window_bounds = array<i64: 1, 8, 32>}, {pipeline_mode = #tpu.pipeline_mode<synchronous>, transform_indices = @transform_1, window_bounds = array<i64: 32, 32>}, {pipeline_mode = #tpu.pipeline_mode<synchronous>, transform_indices = @transform_2, window_bounds = array<i64: 32, 32>}, {transform_indices = @transform_3, window_bounds = array<i64: 1, 8, 32>}]} {
    %c0 = arith.constant 0 : index
    %c0_0 = arith.constant 0 : index
    %c0_1 = arith.constant 0 : index
    %0 = vector.load %arg1[%c0, %c0_0, %c0_1] : memref<1x8x32xf32, #tpu.memory_space<vmem>>, vector<1x8x32xf32>
    %c0_2 = arith.constant 0 : index
    %c0_3 = arith.constant 0 : index
    %1 = vector.load %arg2[%c0_2, %c0_3] : memref<32x32xf32, #tpu.memory_space<vmem>>, vector<32x32xf32>
    %c0_4 = arith.constant 0 : index
    %c0_5 = arith.constant 0 : index
    %2 = vector.load %arg3[%c0_4, %c0_5] : memref<32x32xf32, #tpu.memory_space<vmem>>, vector<32x32xf32>
    "tpu.trace_start"() <{level = 10 : i32, message = "bnd,de->bne"}> : () -> ()
    %cst = arith.constant dense<0.000000e+00> : vector<1x8x32xf32>
    %3 = tpu.matmul %0, %1, %cst {dimension_numbers = #tpu.dot_dimension_numbers<[2], [0], [0, 1], [1], [0, 0, 0, 1, 1, 1], [], []>} : vector<1x8x32xf32>, vector<32x32xf32>, vector<1x8x32xf32> -> vector<1x8x32xf32>
    %cst_6 = arith.constant dense<0.000000e+00> : vector<1x8x32xf32>
    %4 = tpu.matmul %0, %2, %cst_6 {dimension_numbers = #tpu.dot_dimension_numbers<[2], [0], [0, 1], [1], [0, 0, 0, 1, 1, 1], [], []>} : vector<1x8x32xf32>, vector<32x32xf32>, vector<1x8x32xf32> -> vector<1x8x32xf32>
    "tpu.trace_stop"() : () -> ()
    %5 = vector.extract_strided_slice %3 {offsets = [0, 0, 0], sizes = [1, 8, 8], strides = [1, 1, 1]} : vector<1x8x32xf32> to vector<1x8x8xf32>
    %6 = vector.extract_strided_slice %4 {offsets = [0, 0, 0], sizes = [1, 8, 8], strides = [1, 1, 1]} : vector<1x8x32xf32> to vector<1x8x8xf32>
    "tpu.trace_start"() <{level = 10 : i32, message = "bqe,bke->bqk"}> : () -> ()
    %cst_7 = arith.constant dense<0.000000e+00> : vector<1x8x8xf32>
    %7 = tpu.matmul %5, %6, %cst_7 {dimension_numbers = #tpu.dot_dimension_numbers<[2], [2], [1], [1], [0, 0, 0, 1, 1, 1], [0], [0]>} : vector<1x8x8xf32>, vector<1x8x8xf32>, vector<1x8x8xf32> -> vector<1x8x8xf32>
    "tpu.trace_stop"() : () -> ()
    %c0_8 = arith.constant 0 : index
    %c0_9 = arith.constant 0 : index
    %c0_10 = arith.constant 0 : index
    %8 = vector.load %arg4[%c0_8, %c0_9, %c0_10] : memref<1x8x32xf32, #tpu.memory_space<vmem>>, vector<1x8x8xf32>
    tpu.vector_store %arg4[%c0_8, %c0_9, %c0_10], %7 {strides = array<i32>} : memref<1x8x32xf32, #tpu.memory_space<vmem>>, vector<1x8x8xf32>,
    %9 = vector.extract_strided_slice %3 {offsets = [0, 0, 8], sizes = [1, 8, 8], strides = [1, 1, 1]} : vector<1x8x32xf32> to vector<1x8x8xf32>
    %10 = vector.extract_strided_slice %4 {offsets = [0, 0, 8], sizes = [1, 8, 8], strides = [1, 1, 1]} : vector<1x8x32xf32> to vector<1x8x8xf32>
    "tpu.trace_start"() <{level = 10 : i32, message = "bqe,bke->bqk"}> : () -> ()
    %cst_11 = arith.constant dense<0.000000e+00> : vector<1x8x8xf32>
    %11 = tpu.matmul %9, %10, %cst_11 {dimension_numbers = #tpu.dot_dimension_numbers<[2], [2], [1], [1], [0, 0, 0, 1, 1, 1], [0], [0]>} : vector<1x8x8xf32>, vector<1x8x8xf32>, vector<1x8x8xf32> -> vector<1x8x8xf32>
    "tpu.trace_stop"() : () -> ()
    %c0_12 = arith.constant 0 : index
    %c0_13 = arith.constant 0 : index
    %c8 = arith.constant 8 : index
    %12 = vector.load %arg4[%c0_12, %c0_13, %c8] : memref<1x8x32xf32, #tpu.memory_space<vmem>>, vector<1x8x8xf32>
    tpu.vector_store %arg4[%c0_12, %c0_13, %c8], %11 {strides = array<i32>} : memref<1x8x32xf32, #tpu.memory_space<vmem>>, vector<1x8x8xf32>,
    %13 = vector.extract_strided_slice %3 {offsets = [0, 0, 16], sizes = [1, 8, 8], strides = [1, 1, 1]} : vector<1x8x32xf32> to vector<1x8x8xf32>
    %14 = vector.extract_strided_slice %4 {offsets = [0, 0, 16], sizes = [1, 8, 8], strides = [1, 1, 1]} : vector<1x8x32xf32> to vector<1x8x8xf32>
    "tpu.trace_start"() <{level = 10 : i32, message = "bqe,bke->bqk"}> : () -> ()
    %cst_14 = arith.constant dense<0.000000e+00> : vector<1x8x8xf32>
    %15 = tpu.matmul %13, %14, %cst_14 {dimension_numbers = #tpu.dot_dimension_numbers<[2], [2], [1], [1], [0, 0, 0, 1, 1, 1], [0], [0]>} : vector<1x8x8xf32>, vector<1x8x8xf32>, vector<1x8x8xf32> -> vector<1x8x8xf32>
    "tpu.trace_stop"() : () -> ()
    %c0_15 = arith.constant 0 : index
    %c0_16 = arith.constant 0 : index
    %c16 = arith.constant 16 : index
    %16 = vector.load %arg4[%c0_15, %c0_16, %c16] : memref<1x8x32xf32, #tpu.memory_space<vmem>>, vector<1x8x8xf32>
    tpu.vector_store %arg4[%c0_15, %c0_16, %c16], %15 {strides = array<i32>} : memref<1x8x32xf32, #tpu.memory_space<vmem>>, vector<1x8x8xf32>,
    %17 = vector.extract_strided_slice %3 {offsets = [0, 0, 24], sizes = [1, 8, 8], strides = [1, 1, 1]} : vector<1x8x32xf32> to vector<1x8x8xf32>
    %18 = vector.extract_strided_slice %4 {offsets = [0, 0, 24], sizes = [1, 8, 8], strides = [1, 1, 1]} : vector<1x8x32xf32> to vector<1x8x8xf32>
    "tpu.trace_start"() <{level = 10 : i32, message = "bqe,bke->bqk"}> : () -> ()
    %cst_17 = arith.constant dense<0.000000e+00> : vector<1x8x8xf32>
    %19 = tpu.matmul %17, %18, %cst_17 {dimension_numbers = #tpu.dot_dimension_numbers<[2], [2], [1], [1], [0, 0, 0, 1, 1, 1], [0], [0]>} : vector<1x8x8xf32>, vector<1x8x8xf32>, vector<1x8x8xf32> -> vector<1x8x8xf32>
    "tpu.trace_stop"() : () -> ()
    %c0_18 = arith.constant 0 : index
    %c0_19 = arith.constant 0 : index
    %c24 = arith.constant 24 : index
    %20 = vector.load %arg4[%c0_18, %c0_19, %c24] : memref<1x8x32xf32, #tpu.memory_space<vmem>>, vector<1x8x8xf32>
    tpu.vector_store %arg4[%c0_18, %c0_19, %c24], %19 {strides = array<i32>} : memref<1x8x32xf32, #tpu.memory_space<vmem>>, vector<1x8x8xf32>,
    return
  }
  func.func @transform_0(%arg0: i32) -> (i32, i32, i32) {
    %c0_i32 = arith.constant 0 : i32
    %c0_i32_0 = arith.constant 0 : i32
    %c0_i32_1 = arith.constant 0 : i32
    return %arg0, %c0_i32, %c0_i32_0 : i32, i32, i32
  }
  func.func @transform_1(%arg0: i32) -> (i32, i32) {
    %c0_i32 = arith.constant 0 : i32
    %c0_i32_0 = arith.constant 0 : i32
    %c0_i32_1 = arith.constant 0 : i32
    return %c0_i32, %c0_i32_0 : i32, i32
  }
  func.func @transform_2(%arg0: i32) -> (i32, i32) {
    %c0_i32 = arith.constant 0 : i32
    %c0_i32_0 = arith.constant 0 : i32
    %c0_i32_1 = arith.constant 0 : i32
    return %c0_i32, %c0_i32_0 : i32, i32
  }
  func.func @transform_3(%arg0: i32) -> (i32, i32, i32) {
    %c0_i32 = arith.constant 0 : i32
    %c0_i32_0 = arith.constant 0 : i32
    %c0_i32_1 = arith.constant 0 : i32
    return %arg0, %c0_i32, %c0_i32_0 : i32, i32, i32
  }
}

</mosaic_0001>

<bundles_post_ra>
// kernel: tpu_custom_call.1
= control target key start
LH: loop header
LB: loop body
LE: loop exit
PB: predicated region body
PF: predicated region fallthrough
CT: control target
= control target key end

     0   :  { %8 = vsyncpa [#allocation3], 0  ;;  %s960_s0 = inlined_call_operand.hbm [shape: f32[2,8,32], index: 0, kind: input, shape index: {}]   ;;  %s961_s1 = inlined_call_operand.hbm [shape: f32[32,32], index: 1, kind: input, shape index: {}]   ;;  %s962_s2 = inlined_call_operand.hbm [shape: f32[32,32], index: 2, kind: input, shape index: {}]   ;;  %s963_s3 = inlined_call_operand.hbm [shape: f32[2,8,32], index: 3, kind: output, shape index: {}]  }
   0x1   :  { %10 = vsyncpa [#allocation3 + $0x1], 0 }
   0x2   :  { %11 = vsyncpa [#allocation6], 0 }
   0x3   :  { %12 = vsyncpa [#allocation4], 0 }
   0x4   :  { %14 = vsyncpa [#allocation4 + $0x1], 0  ;;  %s802_s12 = smov 0   ;;  %s804_s13 = smov 0  }
   0x5   :  { %s806_s14 = smov 0   ;;  %s808_s15 = smov 0  }
   0x6 LB: > { %s130_s18 = sshll.u32 %s961_s1, 4  ;;  %s826_s19 = sadd.s32 4294967295, %s770_s15   ;;  %s770_s15 = sphi %s808_s15, %s974_s15   ;;  %s766_s14 = sphi %s806_s14, %s973_s14   ;;  %s762_s13 = sphi %s804_s13, %s972_s13   ;;  %s758_s12 = sphi %s802_s12, %s971_s12   ;;  %s131_s18 = int_to_ptr.hbm [resolvable:$true] %s130_s18 }
   0x7   : > { %p510_p0 = scmp.ge.s32.totalorder %s770_s15, 1  ;;  %p41_p1 = scmp.eq.s32.totalorder %s826_s19, 0 }
   0x8   : > { %p119_p2 = scmp.lt.s32.totalorder %s770_s15, 3  ;;  %s772_s21 = smov [#allocation5]  }
   0x9   : > { %s132_s22 = sshll.u32 %s772_s21, 4  ;;  %s144_s25 = sshll.u32 %s962_s2, 4  ;;  %s133_s22 = int_to_ptr.vmem [resolvable:$true] %s132_s22  ;;  %s145_s25 = int_to_ptr.hbm [resolvable:$true] %s144_s25 }
   0xa   : > { %p831_p3 = pnand %p510_p0, %p119_p2  ;;  %s773_s26 = smov [#allocation7]  }
   0xb   : > { %s146_s27 = sshll.u32 %s773_s26, 4  ;;  %s774_s28 = smov 128   ;;  %s147_s27 = int_to_ptr.vmem [resolvable:$true] %s146_s27 }
   0xc   : > { %p547_p4 = pneg %p831_p3  ;;  %s775_s29 = smov 8  }
   0xd   : > { %s509_s30 = sadd.s32 4294967294, %s770_s15   ;;  %s845_s4 = sadd.s32 1, %s770_s15  }
   0xe   : > { %p548_p6 = pnand %p547_p4, %p41_p1  ;;  %s24_s5 = ssub.s32 %s770_s15, %s845_s4 }
   0xf   : > { %s27_s6 = sadd.s32 1, %s766_s14  ;;  %p25_p7 = scmp.eq.s32.totalorder %s24_s5, 0 }
  0x10   : > { %550 = dma.hbm_to_vmem [thread:$0]  (!%p548_p6), %s131_s18, 512, %s133_s22, [#allocation6], %s774_s28, %s774_s28, %s775_s29  }
  0x11   : > { %553 = dma.hbm_to_vmem [thread:$0]  (!%p548_p6), %s145_s25, 512, %s147_s27, [#allocation6], %s774_s28, %s774_s28, %s775_s29  }
  0x12   : > { %p34_p8 = scmp.ne.s32.totalorder %s766_s14, %s762_s13  ;;  %p35_p9 = scmp.eq.s32.totalorder %s770_s15, 0 }
  0x13   : > { %p40_p10 = scmp.ne.s32.totalorder %s762_s13, %s758_s12  ;;  %p106_p13 = scmp.eq.s32.totalorder %s826_s19, 1 }
  0x14   : > { %s856_s7 = scalar_select %p25_p7, %s766_s14, %s27_s6  }
  0x15   : > { %p858_p11 = por %p35_p9, %p34_p8  ;;  %p864_p12 = por %p41_p1, %p40_p10 }
  0x16   : > { %p112_p0 = scmp.eq.s32.totalorder %s509_s30, 1  ;;  %p564_p2 = scmp.lt.s32.totalorder %s770_s15, 2 }
  0x17   : > { %s160_s10 = sand.u32 1, %s766_s14   ;;  %p871_p4 = por %p106_p13, %p34_p8 }
  0x18   : > { %p875_p6 = por %p112_p0, %p40_p10  ;;  %s514_s17 = sshll.u32 %s160_s10, 3 }
  0x19   : > { %s515_s18 = sshll.u32 %s770_s15, 3  ;;  %s164_s24 = scalar_lea.vmem [#allocation2], %s514_s17 }
  0x1a   : > { %s168_s23 = scalar_lea.hbm %s960_s0, %s515_s18  ;;  %s172_s25 = sshll.u32 %s164_s24, 4  ;;  %s173_s25 = int_to_ptr.vmem [resolvable:$true] %s172_s25 }
  0x1b   : > { %s170_s26 = sshll.u32 %s168_s23, 4  ;;  %p885_p7 = pnand %p564_p2, %p858_p11  ;;  %s171_s26 = int_to_ptr.hbm [resolvable:$true] %s170_s26 }
  0x1c   : > { %s161_s28 = scalar_lea.sflag [#allocation3], %s160_s10  ;;  %s670_s29 = sshra.s32 %s171_s26, 4  ;;  %s671_s29 = int_to_ptr.hbm [resolvable:$true] %s670_s29 }
  0x1d   : > { %s672_s30 = scalar_lea.hbm %s671_s29, 8  ;;  %p674_p9 = pneg %p885_p7 }
  0x1e   : > { %p673_p8 = scmp.ne.s32.totalorder %s671_s29, %s672_s30  ;;  %s677_s17 = scalar_lea.hbm %s960_s0, 16 }
  0x1f   : > { %p678_p11 = scmp.lt.s32.totalorder %s671_s29, %s960_s0  ;;  %p679_p0 = scmp.lt.s32.totalorder %s677_s17, %s672_s30 }
  0x20   : > { %p675_p10 = pnand %p674_p9, %p673_p8 }
  0x21   : > { %p680_p2 = por %p679_p0, %p678_p11 }
  0x22   : > { %p676_p13 = pneg %p675_p10 }
  0x24   : > { %p681_p5 = pnand %p680_p2, %p676_p13 }
  0x26   : > { %684 = shalt.err (!%p681_p5)
}
  0x27   : > { %557 = dma.hbm_to_vmem [thread:$0]  (!%p885_p7), %s171_s26, 128, %s173_s25, %s161_s28  }
  0x28   : > { %181 = sbr.rel (%p831_p3) target bundleno = 558 (0x22e), region = 32  ;;  %s902_s10 = sand.u32 (!%p831_p3), 1, %s762_s13  }
  0x29   : > { %s517_s21 = sshll.u32 (!%p831_p3), %s902_s10, 3  ;;  %s184_s22 = scalar_lea.sflag (!%p831_p3), [#allocation3], %s902_s10 }
  0x2a   : > { %s187_s23 = scalar_lea.vmem (!%p831_p3), [#allocation2], %s517_s21 }
  0x2d   : > { %745 = dma.done.wait (%p864_p12), %s184_s22, 128  }
  0x2e   : > { %747 = vsyncadd (%p864_p12), %s184_s22, 4294967168 }
  0x2f   : > { %749 = dma.done.wait (%p41_p1), [#allocation6], 1024  }
  0x30   : > { %751 = vsyncadd (%p41_p1), [#allocation6], 4294966272  ;;  %v225_v0 = vld [vmem:[#allocation5 + $0x18] sm:$0xff]  ;;  %v224_v2 = vld [vmem:[#allocation5 + $0x10] sm:$0xff]  ;;  %vm230_vm0 = vcmask 261120   ;;  %vm274_vm1 = vcmask 64512  }
  0x31   : > { %v229_v1 = vld [vmem:[#allocation7 + $0x18] sm:$0xff]  ;;  %246 = vmatpush.msra.mxu0 %v225_v0  ;;  %v228_v3 = vld [vmem:[#allocation7 + $0x10] sm:$0xff]  ;;  %v223_v4 = vld [vmem:[#allocation5 + $0x8] sm:$0xff]  ;;  %s776_s20 = smov 112   ;;  %s777_s9 = smov 120   ;;  %vm334_vm2 = vcmask 130112  }
  0x32   : > { %266 = vmatpush.msra.mxu1 %v229_v1  ;;  %v227_v5 = vld [vmem:[#allocation7 + $0x8] sm:$0xff]  ;;  %v222_v6 = vld [vmem:[#allocation5] sm:$0xff]  ;;  %v221_v8 = vld [vmem:[%s187_s23] sm:$0xff]  ;;  %s778_s24 = smov 104   ;;  %s220_s25 = scalar_lea.vmem [#allocation8], %s517_s21  ;;  %vm368_vm3 = vcmask 195712  }
  0x33   : > { %247 = vmatpush.msra.mxu0 %v224_v2  ;;  %v226_v7 = vld [vmem:[#allocation7] sm:$0xff]  ;;  %s779_s26 = smov 16   ;;  %s780_s27 = smov 8   ;;  %vm402_vm4 = vcmask 261312  }
  0x34   : > { %267 = vmatpush.msra.mxu1 %v228_v3  ;;  %s781_s28 = smov 24   ;;  %s532_s29 = sshll.u32 %s826_s19, 3 }
  0x35   : > { %248 = vmatpush.msra.mxu0 %v223_v4  ;;  %s415_s6 = scalar_lea.hbm %s963_s3, %s532_s29  ;;  %s417_s17 = sshll.u32 %s220_s25, 4  ;;  %s418_s17 = int_to_ptr.vmem [resolvable:$true] %s417_s17 }
  0x36   : > { %268 = vmatpush.msra.mxu1 %v227_v5  ;;  %s419_s18 = sshll.u32 %s415_s6, 4  ;;  %s405_s8 = scalar_lea.sflag [#allocation4], %s902_s10  ;;  %s420_s18 = int_to_ptr.hbm [resolvable:$true] %s419_s18 }
  0x37   : > { %249 = vmatpush.msra.mxu0 %v222_v6  ;;  %s714_s19 = sshra.s32 %s420_s18, 4  ;;  %s715_s19 = int_to_ptr.hbm [resolvable:$true] %s714_s19 }
  0x38   : > { %269 = vmatpush.msra.mxu1 %v226_v7  ;;  %521 = vmatmul.msk.f32.vlgmr.msra.gmra.mxu0 %vm230_vm0, %v221_v8  ;;  %s716_s21 = scalar_lea.hbm %s715_s19, 8  ;;  %p721_p12 = scmp.lt.s32.totalorder %s715_s19, %s963_s3 }
  0x39   : > { %522 = vmatmul.msk.f32.vlgmr.msra.gmra.mxu1 %vm230_vm0, %v221_v8  ;;  %p717_p1 = scmp.ne.s32.totalorder %s715_s19, %s716_s21 }
  0x3b   : > { %p718_p3 = pnand %p717_p1, %p871_p4 }
  0x3d   : > { %p719_p5 = pneg %p718_p3 }
  0xb5   : > { %v251_v9 = vpop.f32.mrf.mxu0 }
  0xb6   : > { %v271_v10 = vpop.f32.mrf.mxu1  ;;  %336 = vrot.lane.b32.xlu2 %v251_v9, %s776_s20 }
  0xb7   : > { %338 = vrot.lane.b32.xlu1 %v271_v10, %s776_s20  ;;  %304 = vrot.lane.b32.xlu0 %v271_v10, %s777_s9  ;;  %s720_s20 = scalar_lea.hbm %s963_s3, 16 }
  0xb8   : > { %523 = vmatpush.xpose.msk.msra.mxu2 %vm274_vm1, %v271_v10  ;;  %p722_p7 = scmp.lt.s32.totalorder %s720_s20, %s716_s21 }
  0xba   : > { %p723_p8 = por %p722_p7, %p721_p12 }
  0xbb   : > { %524 = vmatmul.msk.f32.vlgmr.msra.gmra.mxu2 %vm274_vm1, %v251_v9 }
  0xbc   : > { %p724_p9 = pnand %p723_p8, %p719_p5 }
  0xbe   : > { %370 = vrot.lane.b32.xlu2 %v251_v9, %s778_s24 }
  0xbf   : > { %372 = vrot.lane.b32.xlu1 %v271_v10, %s778_s24  ;;  %302 = vrot.lane.b32.xlu0 %v251_v9, %s777_s9 }
 0x110   : > { %v337_v13 = vpop.permute.xlu2 %336 }
 0x118   : > { %v371_v16 = vpop.permute.xlu2 %370 }
 0x129   : > { %v339_v11 = vpop.permute.xlu1 %338  ;;  %v305_v12 = vpop.permute.xlu0 %304 }
 0x12a   : > { %525 = vmatpush.xpose.msk.msra.mxu3 %vm274_vm1, %v305_v12  ;;  %527 = vmatpush.xpose.msk.msrb.mxu2 %vm274_vm1, %v339_v11 }
 0x12d   : > { %528 = vmatmul.msk.f32.vlgmr.msrb.gmra.mxu2 %vm274_vm1, %v337_v13 }
 0x131   : > { %v373_v14 = vpop.permute.xlu1 %372  ;;  %v303_v15 = vpop.permute.xlu0 %302 }
 0x132   : > { %526 = vmatmul.msk.f32.vlgmr.msra.gmra.mxu3 %vm274_vm1, %v303_v15 }
 0x133   : > { %529 = vmatpush.xpose.msk.msrb.mxu3 %vm274_vm1, %v373_v14 }
 0x13a   : > { %530 = vmatmul.msk.f32.vlgmr.msrb.gmra.mxu3 %vm274_vm1, %v371_v16 }
 0x13e   : > { %v298_v17 = vpop.f32.mrf.mxu2 }
 0x13f   : > { %301 = vst.msk [vmem:[%s220_s25] sm:$0xff] %vm274_vm1, %v298_v17 }
 0x1b0   : > { %v361_v18 = vpop.f32.mrf.mxu2 }
 0x1b1   : > { %365 = vrot.lane.b32.xlu1 %v361_v18, %s779_s26 }
 0x1b5   : > { %v327_v19 = vpop.f32.mrf.mxu3 }
 0x1b6   : > { %331 = vrot.lane.b32.xlu0 %v327_v19, %s780_s27 }
 0x1bd   : > { %v395_v20 = vpop.f32.mrf.mxu3 }
 0x1be   : > { %399 = vrot.lane.b32.xlu2 %v395_v20, %s781_s28 }
 0x218   : > { %v400_v23 = vpop.permute.xlu2 %399 }
 0x223   : > { %v366_v22 = vpop.permute.xlu1 %365 }
 0x228   : > { %v332_v21 = vpop.permute.xlu0 %331 }
 0x229   : > { %335 = vst.msk [vmem:[%s220_s25] sm:$0xff] %vm334_vm2, %v332_v21 }
 0x22a   : > { %369 = vst.msk [vmem:[%s220_s25] sm:$0xff] %vm368_vm3, %v366_v22 }
 0x22b   : > { %403 = vst.msk [vmem:[%s220_s25] sm:$0xff] %vm402_vm4, %v400_v23 }
 0x22c   : > { %727 = shalt.err (!%p724_p9)
}
 0x22d   : > { %545 = dma.vmem_to_hbm [thread:$0]  (%p871_p4), %s418_s17, 128, %s420_s18, %s405_s8  }
 0x22e PF: > { %s431_s10 = sand.u32 1, %s758_s12   ;;  %p970_p10 = scmp.ge.s32.totalorder %s770_s15, 2 }
 0x22f   : > { %s432_s25 = scalar_lea.sflag [#allocation4], %s431_s10 }
 0x230   : > { %p559_p13 = pnand %p970_p10, %p875_p6 }
 0x232   : > { %p560_p11 = pneg %p559_p13 }
 0x234   : > { %753 = dma.done.wait (%p560_p11), %s432_s25, 128  }
 0x235   : > { %755 = vsyncadd (%p560_p11), %s432_s25, 4294967168  ;;  %p17_p0 = scmp.ge.s32.totalorder %s845_s4, 4   ;;  %s971_s12 = smov %s762_s13 }
 0x236   : > { %s972_s13 = smov %s766_s14  ;;  %s973_s14 = smov %s856_s7 }
 0x237   : > { %s974_s15 = smov %s845_s4  ;;  %19 = sbr.rel (!%p17_p0) target bundleno = 6 (0x6), region = 85 }
 0x23c   :  { %438 = vsyncpa [#allocation3], 1 }
 0x23d   :  { %440 = vsyncpa [#allocation3 + $0x1], 1 }
 0x23e   :  { %441 = vsyncpa [#allocation6], 1 }
 0x23f   :  { %442 = vsyncpa [#allocation4], 1 }
 0x240   :  { %444 = vsyncpa [#allocation4 + $0x1], 1 }

</bundles_post_ra>
